<compile_context>
chip_gen: v5e
topology: v5e:2x2
jax: 0.10.0
libtpu: 0.0.40
codegen_flags: <defaults>
</compile_context>

<pallas_src>
import jax
import jax.numpy as jnp
from jax import lax
from jax.experimental import pallas as pl
from jax.experimental.pallas import tpu as pltpu


# ----------------------------------------------------------------- kernels ---

def _linear_kernel_nored(x_ref, w_ref, b_ref, o_ref):
    # x_ref: (M, K)   w_ref: (tn, K)   b_ref: (1, tn)   o_ref: (M, tn)
    # Single-shot K: no accumulator, no init/finalize predicates.
    acc = lax.dot_general(
        x_ref[...], w_ref[...],
        dimension_numbers=(((1,), (1,)), ((), ())),   # contract K of both
        preferred_element_type=jnp.float32,
    )
    o_ref[...] = (acc + b_ref[...].astype(jnp.float32)).astype(o_ref.dtype)


def _linear_kernel_red(x_ref, w_ref, b_ref, o_ref, acc_ref):
    # x_ref: (M, tk)   w_ref: (tn, tk)   b_ref: (1, tn)
    # o_ref: (M, tn)   acc_ref: (M, tn) f32 scratch persisting across k steps.
    k = pl.program_id(1)

    @pl.when(k == 0)
    def _():
        acc_ref[...] = jnp.zeros_like(acc_ref)

    acc_ref[...] += lax.dot_general(
        x_ref[...], w_ref[...],
        dimension_numbers=(((1,), (1,)), ((), ())),
        preferred_element_type=jnp.float32,
    )

    @pl.when(k == pl.num_programs(1) - 1)
    def _():
        o_ref[...] = (acc_ref[...] + b_ref[...].astype(jnp.float32)
                      ).astype(o_ref.dtype)


# ------------------------------------------------------------- tile choice ---

_K_TILE_CAP = 2048  # keep K whole below this; above, tile the reduction axis


def _round_up(x, m):
    return ((x + m - 1) // m) * m


def _vmem_capacity_bytes():
    try:
        return int(pltpu.get_tpu_info().vmem_capacity_bytes)
    except Exception:
        return 64 * 1024 * 1024  # conservative: assume v7x-sized VMEM


def _budgets(weight_itemsize):
    """(weight-tile budget in elements, vmem_limit_bytes), per generation."""
    vmem = _vmem_capacity_bytes()
    if vmem >= 100 * 1024 * 1024:            # v5e / v6e: 128 MiB physical VMEM
        tile_budget_bytes = 24 * 1024 * 1024
        vmem_limit = 64 * 1024 * 1024
    else:                                    # v7x: 64 MiB per TensorCore
        tile_budget_bytes = 14 * 1024 * 1024
        vmem_limit = 40 * 1024 * 1024
    return tile_budget_bytes // weight_itemsize, vmem_limit


def _largest_aligned_divisor(dim, cap, align=128):
    """Largest multiple-of-`align` divisor of `dim` that is <= cap, or None."""
    best = None
    t = align
    limit = min(dim, cap)
    while t <= limit:
        if dim % t == 0:
            best = t
        t += align
    return best


def _choose_k(K):
    """Returns (K_padded, tk).  Zero-padding the contraction axis is exact."""
    if K <= _K_TILE_CAP:
        return K, K                           # single k step (no reduction axis)
    tk = _largest_aligned_divisor(K, _K_TILE_CAP)
    if tk is not None:
        return K, tk
    return _round_up(K, 512), 512             # fallback: pad K, 512-wide tiles


def _choose_n(N, tk, budget_elems):
    """Returns (N_padded, tn) with tn a multiple of 128 dividing N_padded."""
    # Byte-budget cap on the weight tile (dominant VMEM/DMA consumer).
    cap = max(128, (budget_elems // max(tk, 1)) // 128 * 128)
    # Keep >= 2 N-steps so the "parallel" axis feeds both v7x TensorCores.
    if N >= 256:
        cap = min(cap, max(128, (N // 2) // 128 * 128))
    tn = _largest_aligned_divisor(N, cap)
    if tn is None:
        # No aligned divisor: pad N up to a multiple of a budget-sized tile.
        tn = min(cap, _round_up(N, 128))
        N = _round_up(N, tn)
    return N, tn


# ----------------------------------------------------------------- wrapper ---

def linear_projection_adapter(x, weight, bias, depth, height, width,
                              weight_stream_dtype=None):
    """x: (B, C, H, W). weight: (depth*H*W, H*W) as in nn.Linear. bias: (depth*H*W,).

    `weight_stream_dtype` optionally casts the streamed weight (e.g. bf16) to
    halve HBM traffic; accumulation stays f32.  Default None keeps exact f32
    semantics of the PyTorch module.
    """
    B, C, H, W = x.shape
    assert H == height and W == width, \
        "Input height and width must match the initialized dimensions."
    K = H * W
    N = depth * H * W
    M = B * C
    assert weight.shape == (N, K) and bias.shape == (N,)
    # NOTE: M = B*C is assumed modest (true for this adapter); it is kept
    # untiled so the whole VMEM budget feeds the weight stream.

    w = weight
    if weight_stream_dtype is not None and w.dtype != weight_stream_dtype:
        w = w.astype(weight_stream_dtype)

    budget_elems, vmem_limit = _budgets(jnp.dtype(w.dtype).itemsize)
    Kp, tk = _choose_k(K)
    Np, tn = _choose_n(N, tk, budget_elems)

    x2d = x.reshape(M, K)
    b1d = bias
    if Kp != K:
        # Non-128-aligned large K: zero-pad contraction axis (exact result).
        x2d = jnp.pad(x2d, ((0, 0), (0, Kp - K)))
        w = jnp.pad(w, ((0, 0), (0, Kp - K)))
    if Np != N:
        # Non-128-aligned N: pad weight rows / bias; extra columns sliced off.
        w = jnp.pad(w, ((0, Np - N), (0, 0)))
        b1d = jnp.pad(b1d, ((0, Np - N),))
    b2d = b1d.reshape(1, Np)   # rides the same N-tile pipeline as the output

    if Kp == tk:
        # Common path: K fits whole -> 1-D grid over N, no accumulator.
        grid = (Np // tn,)
        out = pl.pallas_call(
            _linear_kernel_nored,
            out_shape=jax.ShapeDtypeStruct((M, Np), x.dtype),
            grid=grid,
            in_specs=[
                pl.BlockSpec((M, Kp), lambda j: (0, 0)),    # x (tiny, resident)
                pl.BlockSpec((tn, Kp), lambda j: (j, 0)),   # weight, native (N,K)
                pl.BlockSpec((1, tn), lambda j: (0, j)),    # bias
            ],
            out_specs=pl.BlockSpec((M, tn), lambda j: (0, j)),
            compiler_params=pltpu.CompilerParams(
                dimension_semantics=("parallel",),
                vmem_limit_bytes=vmem_limit,
            ),
        )(x2d, w, b2d)
    else:
        # Large K: tile reduction axis (last, "arbitrary") with f32 accumulator.
        grid = (Np // tn, Kp // tk)
        out = pl.pallas_call(
            _linear_kernel_red,
            out_shape=jax.ShapeDtypeStruct((M, Np), x.dtype),
            grid=grid,
            in_specs=[
                pl.BlockSpec((M, tk), lambda j, k: (0, k)),   # x
                pl.BlockSpec((tn, tk), lambda j, k: (j, k)),  # weight, native (N,K)
                pl.BlockSpec((1, tn), lambda j, k: (0, j)),   # bias
            ],
            out_specs=pl.BlockSpec((M, tn), lambda j, k: (0, j)),
            scratch_shapes=[pltpu.VMEM((M, tn), jnp.float32)],
            compiler_params=pltpu.CompilerParams(
                dimension_semantics=("parallel", "arbitrary"),
                vmem_limit_bytes=vmem_limit,
            ),
        )(x2d, w, b2d)

    if Np != N:
        out = out[:, :N]
    return out.reshape(B, C, depth, H, W)


# -------------------------------------------------------------------- init ---

def init_linear_params(key, in_features, out_features, dtype=jnp.float32):
    # Mimic nn.Linear default init: U(-1/sqrt(in), 1/sqrt(in)) for weight & bias.
    kw, kb = jax.random.split(key)
    bound = 1.0 / jnp.sqrt(jnp.asarray(in_features, dtype))
    weight = jax.random.uniform(kw, (out_features, in_features), dtype,
                                minval=-bound, maxval=bound)
    bias = jax.random.uniform(kb, (out_features,), dtype,
                              minval=-bound, maxval=bound)
    return weight, bias


def _reference(x, weight, bias, depth):
    B, C, H, W = x.shape
    return (x.reshape(B, C, H * W) @ weight.T + bias).reshape(B, C, depth, H, W)


def _run_case(key, B, C, H, W, depth, atol):
    k1, k2 = jax.random.split(key)
    x = jax.random.normal(k1, (B, C, H, W), dtype=jnp.float32)
    weight, bias = init_linear_params(k2, H * W, depth * H * W)
    y = jax.block_until_ready(
        linear_projection_adapter(x, weight, bias, depth, H, W))
    ref = _reference(x, weight, bias, depth)
    assert y.shape == (B, C, depth, H, W)
    assert jnp.allclose(y, ref, atol=atol, rtol=atol), \
        f"max abs err {jnp.max(jnp.abs(y - ref))}"


# -------------------------------------------------------------------- main ---

if __name__ == "__main__":
    key = jax.random.PRNGKey(0)
    k1, k2, k3, k4 = jax.random.split(key, 4)

    # 1) Small shapes per the module spec: K=256, N=512 -> no-reduction kernel,
    #    two N-steps (both v7x TensorCores active).
    _run_case(k1, B=2, C=4, H=16, W=16, depth=2, atol=1e-3)

    # 2) Larger N (K=1024, N=8192): exercises budget-sized weight tiles and a
    #    multi-step "parallel" N grid.
    _run_case(k2, B=2, C=3, H=32, W=32, depth=8, atol=2e-3)

    # 3) K > 2048 (K=2304, N=4608): exercises the tiled-reduction kernel with
    #    the f32 VMEM accumulator.
    _run_case(k3, B=2, C=2, H=48, W=48, depth=2, atol=2e-3)

    # 4) Non-128-aligned N (K=144, N=432): exercises the zero-padding fallback.
    _run_case(k4, B=2, C=2, H=12, W=12, depth=3, atol=1e-3)

    print("KERNEL_OK")
</pallas_src>

<mosaic_0001>
module attributes {stable_mosaic.version = 11 : i64} {
  func.func @_linear_kernel_nored(%arg0: i32, %arg1: memref<8x256xf32, #tpu.memory_space<vmem>>, %arg2: memref<256x256xf32, #tpu.memory_space<vmem>>, %arg3: memref<1x256xf32, #tpu.memory_space<vmem>>, %arg4: memref<8x256xf32, #tpu.memory_space<vmem>>) attributes {dimension_semantics = [#tpu.dimension_semantics<parallel>], iteration_bounds = array<i64: 2>, scalar_prefetch = 0 : i64, scratch_operands = 0 : i64, tpu.core_type = #tpu.core_type<tc>, window_params = [{pipeline_mode = #tpu.pipeline_mode<synchronous>, transform_indices = @transform_0, window_bounds = array<i64: 8, 256>}, {transform_indices = @transform_1, window_bounds = array<i64: 256, 256>}, {transform_indices = @transform_2, window_bounds = array<i64: 1, 256>}, {transform_indices = @transform_3, window_bounds = array<i64: 8, 256>}]} {
    %c0 = arith.constant 0 : index
    %c0_0 = arith.constant 0 : index
    %0 = vector.load %arg1[%c0, %c0_0] : memref<8x256xf32, #tpu.memory_space<vmem>>, vector<8x256xf32>
    %c0_1 = arith.constant 0 : index
    %c0_2 = arith.constant 0 : index
    %1 = vector.load %arg2[%c0_1, %c0_2] : memref<256x256xf32, #tpu.memory_space<vmem>>, vector<256x256xf32>
    %cst = arith.constant dense<0.000000e+00> : vector<8x256xf32>
    %2 = tpu.matmul %0, %1, %cst {dimension_numbers = #tpu.dot_dimension_numbers<[1], [1], [0], [0], [0, 0, 1, 0], [], []>} : vector<8x256xf32>, vector<256x256xf32>, vector<8x256xf32> -> vector<8x256xf32>
    %c0_3 = arith.constant 0 : index
    %c0_4 = arith.constant 0 : index
    %3 = vector.load %arg3[%c0_3, %c0_4] : memref<1x256xf32, #tpu.memory_space<vmem>>, vector<1x256xf32>
    %4 = vector.broadcast %3 : vector<1x256xf32> to vector<8x256xf32>
    %5 = arith.addf %2, %4 : vector<8x256xf32>
    %c0_5 = arith.constant 0 : index
    %c0_6 = arith.constant 0 : index
    %6 = vector.load %arg4[%c0_5, %c0_6] : memref<8x256xf32, #tpu.memory_space<vmem>>, vector<8x256xf32>
    tpu.vector_store %arg4[%c0_5, %c0_6], %5 {strides = array<i32>} : memref<8x256xf32, #tpu.memory_space<vmem>>, vector<8x256xf32>,
    return
  }
  func.func @transform_0(%arg0: i32) -> (i32, i32) {
    %c0_i32 = arith.constant 0 : i32
    %c0_i32_0 = arith.constant 0 : i32
    %c0_i32_1 = arith.constant 0 : i32
    return %c0_i32, %c0_i32_0 : i32, i32
  }
  func.func @transform_1(%arg0: i32) -> (i32, i32) {
    %c0_i32 = arith.constant 0 : i32
    %c0_i32_0 = arith.constant 0 : i32
    return %arg0, %c0_i32 : i32, i32
  }
  func.func @transform_2(%arg0: i32) -> (i32, i32) {
    %c0_i32 = arith.constant 0 : i32
    %c0_i32_0 = arith.constant 0 : i32
    return %c0_i32, %arg0 : i32, i32
  }
  func.func @transform_3(%arg0: i32) -> (i32, i32) {
    %c0_i32 = arith.constant 0 : i32
    %c0_i32_0 = arith.constant 0 : i32
    return %c0_i32, %arg0 : i32, i32
  }
}

</mosaic_0001>

<bundles_post_ra>
// kernel: tpu_custom_call.1
= control target key start
LH: loop header
LB: loop body
LE: loop exit
PB: predicated region body
PF: predicated region fallthrough
CT: control target
= control target key end

     0   :  { %s1030_s0 = inlined_call_operand.hbm [shape: f32[8,256], index: 0, kind: input, shape index: {}]   ;;  %s1031_s1 = inlined_call_operand.hbm [shape: f32[512,256], index: 1, kind: input, shape index: {}]   ;;  %s1032_s2 = inlined_call_operand.hbm [shape: f32[1,512], index: 2, kind: input, shape index: {}]   ;;  %s1033_s3 = inlined_call_operand.hbm [shape: f32[8,512], index: 3, kind: output, shape index: {}]  }
   0x1   :  { %1034 = sst [smem:[#allocation12_spill]] %s1030_s0 }
   0x2   :  { %8 = vsyncpa [#allocation3], 0 }
   0x3   :  { %9 = vsyncpa [#allocation6], 0 }
   0x4   :  { %11 = vsyncpa [#allocation6 + $0x1], 0 }
   0x5   :  { %12 = vsyncpa [#allocation4], 0 }
   0x6   :  { %14 = vsyncpa [#allocation4 + $0x1], 0  ;;  %s791_s12 = smov 0   ;;  %s793_s13 = smov 0  }
   0x7   :  { %s795_s14 = smov 0   ;;  %s797_s15 = smov 0  }
   0x8 LB: > { %s812_s16 = sadd.s32 1, %s766_s15   ;;  %s48_s17 = sadd.s32 1, %s762_s14  ;;  %s766_s15 = sphi %s797_s15, %s1045_s15   ;;  %s762_s14 = sphi %s795_s14, %s1044_s14   ;;  %s758_s13 = sphi %s793_s13, %s1043_s13   ;;  %s754_s12 = sphi %s791_s12, %s1042_s12  }
   0x9   : > { %s45_s18 = ssub.s32 %s766_s15, %s812_s16  ;;  %p55_p0 = scmp.ne.s32.totalorder %s762_s14, %s758_s13 }
   0xa   : > { %p46_p1 = scmp.eq.s32.totalorder %s45_s18, 0  ;;  %p56_p2 = scmp.eq.s32.totalorder %s766_s15, 0 }
   0xb   : > { %p568_p4 = scmp.lt.s32.totalorder %s766_s15, 2  ;;  %s149_s20 = sand.u32 1, %s766_s15  }
   0xc   : > { %s823_s19 = scalar_select %p46_p1, %s762_s14, %s48_s17  }
   0xd   : > { %p57_p5 = por %p56_p2, %p55_p0  ;;  %s151_s21 = sand.u32 1, %s762_s14  }
   0xe   : > { %s523_s22 = sshll.u32 %s151_s21, 9  ;;  %s540_s23 = sshll.u32 %s766_s15, 9 }
   0xf   : > { %s159_s26 = scalar_lea.hbm %s1031_s1, %s540_s23  ;;  %s153_s28 = scalar_lea.vmem [#allocation5], %s523_s22 }
  0x10   : > { %s160_s27 = sshll.u32 %s159_s26, 4  ;;  %s162_s29 = sshll.u32 %s153_s28, 4  ;;  %s161_s27 = int_to_ptr.hbm [resolvable:$true] %s160_s27  ;;  %s163_s29 = int_to_ptr.vmem [resolvable:$true] %s162_s29 }
  0x11   : > { %p838_p6 = pnand %p568_p4, %p57_p5  ;;  %s842_s4 = scalar_lea.sflag [#allocation6], %s149_s20 }
  0x12   : > { %s606_s5 = sshra.s32 %s161_s27, 4  ;;  %s613_s9 = scalar_lea.hbm %s1031_s1, 1024  ;;  %s607_s5 = int_to_ptr.hbm [resolvable:$true] %s606_s5 }
  0x13   : > { %s608_s6 = scalar_lea.hbm %s607_s5, 512  ;;  %p610_p8 = pneg %p838_p6 }
  0x14   : > { %p609_p7 = scmp.ne.s32.totalorder %s607_s5, %s608_s6  ;;  %p614_p11 = scmp.lt.s32.totalorder %s607_s5, %s1031_s1 }
  0x15   : > { %p615_p12 = scmp.lt.s32.totalorder %s613_s9, %s608_s6 }
  0x16   : > { %p611_p9 = pnand %p610_p8, %p609_p7 }
  0x17   : > { %p616_p13 = por %p615_p12, %p614_p11 }
  0x18   : > { %p612_p10 = pneg %p611_p9 }
  0x1a   : > { %p617_p1 = pnand %p616_p13, %p612_p10 }
  0x1c   : > { %620 = shalt.err (!%p617_p1)
}
  0x1d   : > { %s768_s17 = smov 256   ;;  %s769_s18 = smov 16  }
  0x1e   : > { %559 = dma.hbm_to_vmem [thread:$0]  (!%p838_p6), %s161_s27, 8192, %s163_s29, %s842_s4, %s768_s17, %s768_s17, %s769_s18  }
  0x1f   : > { %s859_s20 = sadd.s32 4294967295, %s766_s15   ;;  %s519_s22 = sadd.s32 4294967294, %s766_s15  }
  0x20   : > { %p61_p2 = scmp.ne.s32.totalorder %s758_s13, %s754_s12  ;;  %p62_p4 = scmp.eq.s32.totalorder %s859_s20, 0 }
  0x21   : > { %p111_p5 = scmp.eq.s32.totalorder %s859_s20, 1  ;;  %p117_p7 = scmp.eq.s32.totalorder %s519_s22, 1 }
  0x22   : > { %p868_p9 = por %p62_p4, %p61_p2  ;;  %p520_p10 = scmp.ge.s32.totalorder %s766_s15, 1 }
  0x23   : > { %p876_p11 = por %p111_p5, %p55_p0  ;;  %p880_p12 = por %p117_p7, %p61_p2 }
  0x24   : > { %p124_p13 = scmp.lt.s32.totalorder %s766_s15, 3  ;;  %s1039_s0 = sld [smem:[#allocation12_spill]] }
  0x25   : > { %s770_s5 = smov [#allocation2]   ;;  %s527_s7 = sshll.u32 %s151_s21, 1 }
  0x26   : > { %p888_p1 = pnand %p520_p10, %p124_p13  ;;  %s138_s6 = sshll.u32 %s770_s5, 4  ;;  %s139_s6 = int_to_ptr.vmem [resolvable:$true] %s138_s6 }
  0x27   : > { %s528_s8 = sshll.u32 %s766_s15, 1  ;;  %s176_s18 = scalar_lea.vmem [#allocation7], %s527_s7 }
  0x28   : > { %p552_p0 = pneg %p888_p1  ;;  %s180_s11 = scalar_lea.hbm %s1032_s2, %s528_s8 }
  0x29   : > { %s182_s17 = sshll.u32 %s180_s11, 4  ;;  %s184_s22 = sshll.u32 %s176_s18, 4  ;;  %s183_s17 = int_to_ptr.hbm [resolvable:$true] %s182_s17  ;;  %s185_s22 = int_to_ptr.vmem [resolvable:$true] %s184_s22 }
  0x2a   : > { %s136_s28 = sshll.u32 %s1039_s0, 4  ;;  %p553_p2 = pnand %p552_p0, %p62_p4  ;;  %s137_s28 = int_to_ptr.hbm [resolvable:$true] %s136_s28 }
  0x2b   : > { %s666_s26 = sshra.s32 %s183_s17, 4  ;;  %s673_s0 = scalar_lea.hbm %s1032_s2, 4  ;;  %s667_s26 = int_to_ptr.hbm [resolvable:$true] %s666_s26 }
  0x2c   : > { %555 = dma.hbm_to_vmem [thread:$0]  (!%p553_p2), %s137_s28, 256, %s139_s6, [#allocation3]  }
  0x2d   : > { %s668_s21 = scalar_lea.hbm %s667_s26, 2  ;;  %p674_p13 = scmp.lt.s32.totalorder %s667_s26, %s1032_s2 }
  0x2e   : > { %p669_p5 = scmp.ne.s32.totalorder %s667_s26, %s668_s21  ;;  %p675_p0 = scmp.lt.s32.totalorder %s673_s0, %s668_s21 }
  0x30   : > { %p671_p7 = pnand %p669_p5, %p610_p8  ;;  %p676_p3 = por %p675_p0, %p674_p13 }
  0x32   : > { %p672_p10 = pneg %p671_p7 }
  0x34   : > { %p677_p2 = pnand %p676_p3, %p672_p10 }
  0x36   : > { %680 = shalt.err (!%p677_p2)
}
  0x37   : > { %562 = dma.hbm_to_vmem [thread:$0]  (!%p838_p6), %s183_s17, 32, %s185_s22, %s842_s4  }
  0x38   : > { %193 = sbr.rel (%p888_p1) target bundleno = 269 (0x10d), region = 32 }
  0x3d   : > { %741 = dma.done.wait (%p62_p4), [#allocation3], 256  }
  0x3e   : > { %743 = vsyncadd (%p62_p4), [#allocation3], 4294967040  ;;  %s200_s0 = sand.u32 1, %s859_s20   ;;  %s922_s28 = sand.u32 1, %s758_s13  }
  0x3f   : > { %s531_s6 = sshll.u32 %s922_s28, 9  ;;  %s201_s30 = scalar_lea.sflag [#allocation6], %s200_s0 }
  0x40   : > { %s925_s7 = scalar_lea.vmem [#allocation5], %s531_s6 }
  0x41   : > { %745 = dma.done.wait (%p868_p9), %s201_s30, 8224  }
  0x42   : > { %747 = vsyncadd (%p868_p9), %s201_s30, 4294959072  ;;  %v310_v0 = vld [vmem:[%s925_s7 + $0x1f0] sm:$0xff]  ;;  %v311_v1 = vld [vmem:[%s925_s7 + $0x1f8] sm:$0xff]  ;;  %s532_s4 = sshll.u32 %s922_s28, 1  ;;  %s533_s29 = sshll.u32 %s922_s28, 4 }
  0x43   : > { %358 = vmatpush.xpose.msra.mxu2 %v310_v0  ;;  %378 = vmatpush.xpose.msra.mxu3 %v311_v1  ;;  %v278_v2 = vld [vmem:[%s925_s7 + $0xf0] sm:$0xff]  ;;  %v279_v3 = vld [vmem:[%s925_s7 + $0xf8] sm:$0xff]  ;;  %v308_v4 = vld [vmem:[%s925_s7 + $0x1e0] sm:$0xff]  ;;  %s214_s23 = scalar_lea.vmem [#allocation7], %s532_s4  ;;  %s541_s10 = sshll.u32 %s859_s20, 4 }
  0x44   : > { %318 = vmatpush.xpose.msra.mxu0 %v278_v2  ;;  %v309_v5 = vld [vmem:[%s925_s7 + $0x1e8] sm:$0xff]  ;;  %338 = vmatpush.xpose.msra.mxu1 %v279_v3  ;;  %v276_v6 = vld [vmem:[%s925_s7 + $0xe0] sm:$0xff]  ;;  %v306_v8 = vld [vmem:[%s925_s7 + $0x1d0] sm:$0xff]  ;;  %s412_s18 = scalar_lea.hbm %s1033_s3, %s541_s10  ;;  %s242_s22 = scalar_lea.vmem [#allocation8], %s533_s29 }
  0x45   : > { %v277_v7 = vld [vmem:[%s925_s7 + $0xe8] sm:$0xff]  ;;  %v307_v9 = vld [vmem:[%s925_s7 + $0x1d8] sm:$0xff]  ;;  %v274_v10 = vld [vmem:[%s925_s7 + $0xd0] sm:$0xff]  ;;  %s414_s26 = sshll.u32 %s242_s22, 4  ;;  %s416_s21 = sshll.u32 %s412_s18, 4  ;;  %s415_s26 = int_to_ptr.vmem [resolvable:$true] %s414_s26  ;;  %s417_s21 = int_to_ptr.hbm [resolvable:$true] %s416_s21 }
  0x46   : > { %v275_v11 = vld [vmem:[%s925_s7 + $0xd8] sm:$0xff]  ;;  %v304_v12 = vld [vmem:[%s925_s7 + $0x1c0] sm:$0xff]  ;;  %v305_v13 = vld [vmem:[%s925_s7 + $0x1c8] sm:$0xff]  ;;  %s401_s20 = scalar_lea.sflag [#allocation4], %s922_s28  ;;  %s710_s27 = sshra.s32 %s417_s21, 4  ;;  %s711_s27 = int_to_ptr.hbm [resolvable:$true] %s710_s27 }
  0x47   : > { %359 = vmatpush.xpose.msra.mxu2 %v308_v4  ;;  %379 = vmatpush.xpose.msra.mxu3 %v309_v5  ;;  %v272_v14 = vld [vmem:[%s925_s7 + $0xc0] sm:$0xff]  ;;  %v273_v15 = vld [vmem:[%s925_s7 + $0xc8] sm:$0xff]  ;;  %v302_v16 = vld [vmem:[%s925_s7 + $0x1b0] sm:$0xff]  ;;  %s712_s5 = scalar_lea.hbm %s711_s27, 16  ;;  %s716_s0 = scalar_lea.hbm %s1033_s3, 32 }
  0x48   : > { %319 = vmatpush.xpose.msra.mxu0 %v276_v6  ;;  %339 = vmatpush.xpose.msra.mxu1 %v277_v7  ;;  %v303_v17 = vld [vmem:[%s925_s7 + $0x1b8] sm:$0xff]  ;;  %v270_v18 = vld [vmem:[%s925_s7 + $0xb0] sm:$0xff]  ;;  %v300_v20 = vld [vmem:[%s925_s7 + $0x1a0] sm:$0xff]  ;;  %p713_p3 = scmp.ne.s32.totalorder %s711_s27, %s712_s5  ;;  %p717_p4 = scmp.lt.s32.totalorder %s711_s27, %s1033_s3 }
  0x49   : > { %v271_v19 = vld [vmem:[%s925_s7 + $0xb8] sm:$0xff]  ;;  %v301_v21 = vld [vmem:[%s925_s7 + $0x1a8] sm:$0xff]  ;;  %v268_v22 = vld [vmem:[%s925_s7 + $0xa0] sm:$0xff]  ;;  %p718_p9 = scmp.lt.s32.totalorder %s716_s0, %s712_s5 }
  0x4a   : > { %v269_v23 = vld [vmem:[%s925_s7 + $0xa8] sm:$0xff]  ;;  %v298_v24 = vld [vmem:[%s925_s7 + $0x190] sm:$0xff]  ;;  %v299_v25 = vld [vmem:[%s925_s7 + $0x198] sm:$0xff]  ;;  %p714_p6 = pnand %p713_p3, %p876_p11 }
  0x4b   : > { %360 = vmatpush.xpose.msra.mxu2 %v306_v8  ;;  %380 = vmatpush.xpose.msra.mxu3 %v307_v9  ;;  %v266_v26 = vld [vmem:[%s925_s7 + $0x90] sm:$0xff]  ;;  %v267_v27 = vld [vmem:[%s925_s7 + $0x98] sm:$0xff]  ;;  %v296_v28 = vld [vmem:[%s925_s7 + $0x180] sm:$0xff]  ;;  %p719_p1 = por %p718_p9, %p717_p4 }
  0x4c   : > { %320 = vmatpush.xpose.msra.mxu0 %v274_v10  ;;  %340 = vmatpush.xpose.msra.mxu1 %v275_v11  ;;  %v297_v29 = vld [vmem:[%s925_s7 + $0x188] sm:$0xff]  ;;  %v264_v30 = vld [vmem:[%s925_s7 + $0x80] sm:$0xff]  ;;  %v294_v32 = vld [vmem:[%s925_s7 + $0x170] sm:$0xff]  ;;  %p715_p8 = pneg %p714_p6 }
  0x4d   : > { %v265_v31 = vld [vmem:[%s925_s7 + $0x88] sm:$0xff]  ;;  %v295_v33 = vld [vmem:[%s925_s7 + $0x178] sm:$0xff]  ;;  %v262_v34 = vld [vmem:[%s925_s7 + $0x70] sm:$0xff] }
  0x4e   : > { %v263_v35 = vld [vmem:[%s925_s7 + $0x78] sm:$0xff]  ;;  %v292_v36 = vld [vmem:[%s925_s7 + $0x160] sm:$0xff]  ;;  %v293_v37 = vld [vmem:[%s925_s7 + $0x168] sm:$0xff]  ;;  %p720_p5 = pnand %p719_p1, %p715_p8 }
  0x4f   : > { %361 = vmatpush.xpose.msra.mxu2 %v304_v12  ;;  %381 = vmatpush.xpose.msra.mxu3 %v305_v13  ;;  %v260_v38 = vld [vmem:[%s925_s7 + $0x60] sm:$0xff]  ;;  %v261_v39 = vld [vmem:[%s925_s7 + $0x68] sm:$0xff]  ;;  %v290_v40 = vld [vmem:[%s925_s7 + $0x150] sm:$0xff] }
  0x50   : > { %321 = vmatpush.xpose.msra.mxu0 %v272_v14  ;;  %341 = vmatpush.xpose.msra.mxu1 %v273_v15  ;;  %v291_v41 = vld [vmem:[%s925_s7 + $0x158] sm:$0xff]  ;;  %v258_v42 = vld [vmem:[%s925_s7 + $0x50] sm:$0xff]  ;;  %v288_v44 = vld [vmem:[%s925_s7 + $0x140] sm:$0xff] }
  0x51   : > { %v259_v43 = vld [vmem:[%s925_s7 + $0x58] sm:$0xff]  ;;  %v289_v45 = vld [vmem:[%s925_s7 + $0x148] sm:$0xff]  ;;  %v256_v46 = vld [vmem:[%s925_s7 + $0x40] sm:$0xff] }
  0x52   : > { %v257_v47 = vld [vmem:[%s925_s7 + $0x48] sm:$0xff]  ;;  %v286_v48 = vld [vmem:[%s925_s7 + $0x130] sm:$0xff]  ;;  %v287_v49 = vld [vmem:[%s925_s7 + $0x138] sm:$0xff] }
  0x53   : > { %362 = vmatpush.xpose.msra.mxu2 %v302_v16  ;;  %382 = vmatpush.xpose.msra.mxu3 %v303_v17  ;;  %v254_v50 = vld [vmem:[%s925_s7 + $0x30] sm:$0xff]  ;;  %v255_v51 = vld [vmem:[%s925_s7 + $0x38] sm:$0xff]  ;;  %v284_v52 = vld [vmem:[%s925_s7 + $0x120] sm:$0xff] }
  0x54   : > { %322 = vmatpush.xpose.msra.mxu0 %v270_v18  ;;  %342 = vmatpush.xpose.msra.mxu1 %v271_v19  ;;  %v285_v53 = vld [vmem:[%s925_s7 + $0x128] sm:$0xff]  ;;  %v252_v54 = vld [vmem:[%s925_s7 + $0x20] sm:$0xff]  ;;  %v282_v56 = vld [vmem:[%s925_s7 + $0x110] sm:$0xff] }
  0x55   : > { %v253_v55 = vld [vmem:[%s925_s7 + $0x28] sm:$0xff]  ;;  %v283_v57 = vld [vmem:[%s925_s7 + $0x118] sm:$0xff]  ;;  %v250_v58 = vld [vmem:[%s925_s7 + $0x10] sm:$0xff] }
  0x56   : > { %v251_v59 = vld [vmem:[%s925_s7 + $0x18] sm:$0xff]  ;;  %v280_v60 = vld [vmem:[%s925_s7 + $0x100] sm:$0xff]  ;;  %v281_v61 = vld [vmem:[%s925_s7 + $0x108] sm:$0xff] }
  0x57   : > { %363 = vmatpush.xpose.msra.mxu2 %v300_v20  ;;  %383 = vmatpush.xpose.msra.mxu3 %v301_v21  ;;  %v248_v62 = vld [vmem:[%s925_s7] sm:$0xff]  ;;  %v249_v63 = vld [vmem:[%s925_s7 + $0x8] sm:$0xff]  ;;  %v246_v0 = vld [vmem:[#allocation2] sm:$0xff] }
  0x58   : > { %323 = vmatpush.xpose.msra.mxu0 %v268_v22  ;;  %343 = vmatpush.xpose.msra.mxu1 %v269_v23  ;;  %v247_v1 = vld [vmem:[#allocation2 + $0x8] sm:$0xff]  ;;  %v312_v2 = vld [vmem:[%s214_s23] sm:$0x3] }
  0x59   : > { %v314_v3 = vperm.slane %v312_v2, 0  ;;  %v315_v7 = vperm.slane %v312_v2, 1 }
  0x5b   : > { %364 = vmatpush.xpose.msra.mxu2 %v298_v24  ;;  %384 = vmatpush.xpose.msra.mxu3 %v299_v25 }
  0x5c   : > { %324 = vmatpush.xpose.msra.mxu0 %v266_v26  ;;  %344 = vmatpush.xpose.msra.mxu1 %v267_v27 }
  0x5f   : > { %365 = vmatpush.xpose.msra.mxu2 %v296_v28  ;;  %385 = vmatpush.xpose.msra.mxu3 %v297_v29 }
  0x60   : > { %325 = vmatpush.xpose.msra.mxu0 %v264_v30  ;;  %345 = vmatpush.xpose.msra.mxu1 %v265_v31 }
  0x63   : > { %366 = vmatpush.xpose.msra.mxu2 %v294_v32  ;;  %386 = vmatpush.xpose.msra.mxu3 %v295_v33 }
  0x64   : > { %326 = vmatpush.xpose.msra.mxu0 %v262_v34  ;;  %346 = vmatpush.xpose.msra.mxu1 %v263_v35 }
  0x67   : > { %367 = vmatpush.xpose.msra.mxu2 %v292_v36  ;;  %387 = vmatpush.xpose.msra.mxu3 %v293_v37 }
  0x68   : > { %327 = vmatpush.xpose.msra.mxu0 %v260_v38  ;;  %347 = vmatpush.xpose.msra.mxu1 %v261_v39 }
  0x6b   : > { %368 = vmatpush.xpose.msra.mxu2 %v290_v40  ;;  %388 = vmatpush.xpose.msra.mxu3 %v291_v41 }
  0x6c   : > { %328 = vmatpush.xpose.msra.mxu0 %v258_v42  ;;  %348 = vmatpush.xpose.msra.mxu1 %v259_v43 }
  0x6f   : > { %369 = vmatpush.xpose.msra.mxu2 %v288_v44  ;;  %389 = vmatpush.xpose.msra.mxu3 %v289_v45 }
  0x70   : > { %329 = vmatpush.xpose.msra.mxu0 %v256_v46  ;;  %349 = vmatpush.xpose.msra.mxu1 %v257_v47 }
  0x73   : > { %370 = vmatpush.xpose.msra.mxu2 %v286_v48  ;;  %390 = vmatpush.xpose.msra.mxu3 %v287_v49 }
  0x74   : > { %330 = vmatpush.xpose.msra.mxu0 %v254_v50  ;;  %350 = vmatpush.xpose.msra.mxu1 %v255_v51 }
  0x77   : > { %371 = vmatpush.xpose.msra.mxu2 %v284_v52  ;;  %391 = vmatpush.xpose.msra.mxu3 %v285_v53 }
  0x78   : > { %331 = vmatpush.xpose.msra.mxu0 %v252_v54  ;;  %351 = vmatpush.xpose.msra.mxu1 %v253_v55 }
  0x7b   : > { %372 = vmatpush.xpose.msra.mxu2 %v282_v56  ;;  %392 = vmatpush.xpose.msra.mxu3 %v283_v57 }
  0x7c   : > { %332 = vmatpush.xpose.msra.mxu0 %v250_v58  ;;  %352 = vmatpush.xpose.msra.mxu1 %v251_v59 }
  0x7f   : > { %373 = vmatpush.xpose.msra.mxu2 %v280_v60  ;;  %393 = vmatpush.xpose.msra.mxu3 %v281_v61 }
  0x80   : > { %333 = vmatpush.xpose.msra.mxu0 %v248_v62  ;;  %353 = vmatpush.xpose.msra.mxu1 %v249_v63 }
  0x82   : > { %374 = vmatmul.f32.vlgmr.msra.gmra.mxu2 %v246_v0  ;;  %394 = vmatmul.f32.vlgmr.msra.gmra.mxu3 %v247_v1 }
  0x83   : > { %334 = vmatmul.f32.vlgmr.msra.gmra.mxu0 %v246_v0  ;;  %354 = vmatmul.f32.vlgmr.msra.gmra.mxu1 %v247_v1 }
 0x100   : > { %v335_v4 = vpop.f32.mrf.mxu0  ;;  %v355_v5 = vpop.f32.mrf.mxu1 }
 0x101   : > { %v336_v6 = vadd.f32 %v335_v4, %v314_v3 }
 0x103   : > { %v356_v8 = vadd.f32 %v355_v5, %v336_v6 }
 0x105   : > { %v375_v9 = vpop.f32.mrf.mxu2  ;;  %398 = vst [vmem:[%s242_s22] sm:$0xff] %v356_v8  ;;  %v395_v10 = vpop.f32.mrf.mxu3 }
 0x106   : > { %v376_v11 = vadd.f32 %v375_v9, %v315_v7 }
 0x108   : > { %v396_v12 = vadd.f32 %v395_v10, %v376_v11 }
 0x10a   : > { %399 = vst [vmem:[%s242_s22 + $0x8] sm:$0xff] %v396_v12 }
 0x10b   : > { %723 = shalt.err (!%p720_p5)
}
 0x10c   : > { %550 = dma.vmem_to_hbm [thread:$0]  (%p876_p11), %s415_s26, 256, %s417_s21, %s401_s20  }
 0x10d PF: > { %s428_s28 = sand.u32 1, %s754_s12   ;;  %p1041_p7 = scmp.ge.s32.totalorder %s766_s15, 2 }
 0x10e   : > { %s429_s7 = scalar_lea.sflag [#allocation4], %s428_s28 }
 0x10f   : > { %p564_p10 = pnand %p1041_p7, %p880_p12 }
 0x111   : > { %p565_p13 = pneg %p564_p10 }
 0x113   : > { %749 = dma.done.wait (%p565_p13), %s429_s7, 256  }
 0x114   : > { %751 = vsyncadd (%p565_p13), %s429_s7, 4294967040  ;;  %p17_p0 = scmp.ge.s32.totalorder %s812_s16, 4   ;;  %s1042_s12 = smov %s758_s13 }
 0x115   : > { %s1043_s13 = smov %s762_s14  ;;  %s1044_s14 = smov %s823_s19 }
 0x116   : > { %s1045_s15 = smov %s812_s16  ;;  %19 = sbr.rel (!%p17_p0) target bundleno = 8 (0x8), region = 93 }
 0x11b   :  { %435 = vsyncpa [#allocation3], 1 }
 0x11c   :  { %437 = vsyncpa [#allocation3 + $0x1], 1 }
 0x11d   :  { %438 = vsyncpa [#allocation6], 1 }
 0x11e   :  { %440 = vsyncpa [#allocation6 + $0x1], 1 }
 0x11f   :  { %441 = vsyncpa [#allocation4], 1 }
 0x120   :  { %443 = vsyncpa [#allocation4 + $0x1], 1 }

</bundles_post_ra>
